<compile_context>
chip_gen: v6e
topology: v6e:2x2x1
jax: 0.10.0
libtpu: 0.0.40
codegen_flags: <defaults>
</compile_context>

<pallas_src>
import functools

import numpy as np
import jax
import jax.numpy as jnp
from jax import lax
from jax.experimental import pallas as pl
from jax.experimental.pallas import tpu as pltpu

_EPS = 1e-10
_ON_TPU = jax.default_backend() == "tpu"


def _recip(x):
    """EUP approximate reciprocal on real TPUs; portable fallback elsewhere."""
    if _ON_TPU:
        return pl.reciprocal(x, approx=True)
    return 1.0 / x


# ----------------------------------------------------------------------------
# Kernels
# ----------------------------------------------------------------------------
def _train_kernel(prec_ref, temp_ref,                              # SMEM scalars
                  ze_ref, booksT_ref, books_ref, b2_ref, cp_ref, g_ref,  # VMEM inputs
                  probs_ref, zq_ref,                               # VMEM outputs
                  *, n_clusters, book_size):
    k = book_size
    prec = prec_ref[0]
    inv_temp = 1.0 / temp_ref[0]

    z = ze_ref[...]                                                # (T, D)
    z_sq = jnp.sum(z * z, axis=-1, keepdims=True)                  # (T, 1)

    # Single fused MXU matmul against all C codebooks: (T, D) @ (D, C*K).
    cross = jnp.dot(z, booksT_ref[...], preferred_element_type=jnp.float32)
    logit_all = -(z_sq + b2_ref[...] - 2.0 * cross) * prec         # (T, C*K)

    g = g_ref[...]                                                 # (T, C*K) Gumbel noise
    cp = cp_ref[...]                                               # (T, C) class probs

    logits_mix = jnp.zeros((z.shape[0], k), jnp.float32)           # never written to HBM raw
    enc_slices = []
    for c in range(n_clusters):                                    # unrolled; VPU/EUP only
        lc = logit_all[:, c * k:(c + 1) * k]                       # (T, K) 64-lane slice
        cpc = cp[:, c:c + 1]                                       # (T, 1)
        logits_mix = logits_mix + lc * cpc
        # Gumbel-softmax relaxation of the codeword assignment (per-cluster softmax).
        yc = (lc + g[:, c * k:(c + 1) * k]) * inv_temp
        yc = yc - jnp.max(yc, axis=-1, keepdims=True)
        ec = jnp.exp(yc)
        enc = ec * _recip(jnp.sum(ec, axis=-1, keepdims=True))
        enc_slices.append(enc * cpc)                               # fold class prob into weights

    enc_all = jnp.concatenate(enc_slices, axis=-1)                 # (T, C*K)
    # Second fused MXU matmul: (T, C*K) @ (C*K, D) -> 256-deep contraction.
    zq_ref[...] = jnp.dot(enc_all, books_ref[...], preferred_element_type=jnp.float32)

    # softmax / log-softmax of the mixture logits.
    m = jnp.max(logits_mix, axis=-1, keepdims=True)
    sh = logits_mix - m
    e = jnp.exp(sh)
    s = jnp.sum(e, axis=-1, keepdims=True)
    prob = e * _recip(s)
    log_prob = sh - jnp.log(s)
    probs_ref[...] = jnp.concatenate([prob, log_prob], axis=-1)    # lane-dense (T, 2K)


def _eval_kernel(prec_ref,                                         # SMEM scalar
                 ze_ref, booksT_ref, books_ref, b2_ref, oh_ref,    # VMEM inputs
                 probs_ref, zq_ref,                                # VMEM outputs
                 *, n_clusters, book_size):
    k = book_size
    prec = prec_ref[0]

    z = ze_ref[...]                                                # (T, D)
    z_sq = jnp.sum(z * z, axis=-1, keepdims=True)
    cross = jnp.dot(z, booksT_ref[...], preferred_element_type=jnp.float32)
    logit_all = -(z_sq + b2_ref[...] - 2.0 * cross) * prec         # (T, C*K)

    oh = oh_ref[...]                                               # (T, C) one-hot cluster select
    logit_sel = jnp.zeros((z.shape[0], k), jnp.float32)
    for c in range(n_clusters):                                    # select the argmax book's logits
        logit_sel = logit_sel + logit_all[:, c * k:(c + 1) * k] * oh[:, c:c + 1]

    # Hard one-hot over the selected codebook (first max index, like torch.argmax).
    col = lax.broadcasted_iota(jnp.int32, logit_sel.shape, 1)
    mx = jnp.max(logit_sel, axis=-1, keepdims=True)
    first = jnp.min(jnp.where(logit_sel == mx, col, k), axis=-1, keepdims=True)
    enc = (col == first).astype(jnp.float32)                       # (T, K)

    # Scatter the hard one-hot into the selected cluster's lanes, one fused matmul for zq.
    enc_all = jnp.concatenate([enc * oh[:, c:c + 1] for c in range(n_clusters)], axis=-1)
    zq_ref[...] = jnp.dot(enc_all, books_ref[...], preferred_element_type=jnp.float32)

    sh = logit_sel - mx
    e = jnp.exp(sh)
    s = jnp.sum(e, axis=-1, keepdims=True)
    prob = e * _recip(s)
    log_prob = sh - jnp.log(s)
    probs_ref[...] = jnp.concatenate([prob, log_prob], axis=-1)    # lane-dense (T, 2K)


# ----------------------------------------------------------------------------
# Parameters + plain-JAX glue
# ----------------------------------------------------------------------------
def init_params(key, book_size, latent_ndim, n_clusters,
                param_q_init=1.0, param_q_cls_init=1.0):
    keys = jax.random.split(key, n_clusters)
    books = jnp.stack(
        [jax.random.normal(kk, (book_size, latent_ndim), jnp.float32) for kk in keys]
    )  # (n_clusters, book_size, D) — matches nn.ParameterList of randn(book_size, D)
    return dict(
        books=books,
        log_param_q=jnp.asarray(np.log(param_q_init), jnp.float32),
        log_param_q_cls=jnp.asarray(np.log(param_q_cls_init), jnp.float32),
    )


def _precision(log_param_q):
    param_q = 1.0 + jnp.exp(log_param_q)
    return 0.5 / jnp.maximum(param_q, 1e-10)


def _class_prob(params, c_logits, temperature, key):
    """Class-level gumbel-softmax relaxation (tiny (B,C): plain JAX)."""
    precision_q_cls = _precision(params["log_param_q_cls"])
    u = jax.random.uniform(key, c_logits.shape, jnp.float32)
    g = -jnp.log(-jnp.log(u + _EPS) + _EPS)
    return jax.nn.softmax((c_logits * precision_q_cls + g) / temperature, axis=-1)


def _codeword_gumbel(key, shape):
    u = jax.random.uniform(key, shape, jnp.float32)
    return -jnp.log(-jnp.log(u + _EPS) + _EPS)


def _round_up(x, m):
    return ((x + m - 1) // m) * m


def _row_tile(bn, cap=2048):
    # cap=2048 keeps double-buffered I/O + the handful of (tile, C*K) f32 temporaries
    # well inside v7x's 64 MiB VMEM; when there is enough work keep >= 2 grid steps so
    # both v7x TensorCores are used (v5e/v6e are single-TC, the split is harmless there).
    r = _round_up(bn, 8)
    if r <= cap:
        if r > 1024:
            return _round_up((r + 1) // 2, 8)
        return r
    return cap


def _flat_books(books):
    c, k, d = books.shape
    books_flat = books.reshape(c * k, d)                           # (C*K, D)
    booksT_flat = jnp.transpose(books_flat)                        # (D, C*K)
    b2_flat = jnp.sum(books_flat * books_flat, axis=-1)[None, :]   # (1, C*K)
    return books_flat, booksT_flat, b2_flat


def _pad_rows(x, rows):
    pad = rows - x.shape[0]
    if pad == 0:
        return x
    return jnp.pad(x, ((0, pad),) + ((0, 0),) * (x.ndim - 1))


_COMPILER_PARAMS = pltpu.CompilerParams(
    dimension_semantics=("parallel",),
    vmem_limit_bytes=64 * 1024 * 1024,
)


def gvq_forward_train(params, ze, c_logits, temperature, key):
    """is_train=True path."""
    b, n_pts, d = ze.shape
    books = params["books"].astype(jnp.float32)
    n_clusters, book_size, _ = books.shape
    ck = n_clusters * book_size

    precision_q = _precision(params["log_param_q"])
    k_cls, k_code = jax.random.split(key)
    c_prob = _class_prob(params, c_logits, temperature, k_cls)       # (B, C)

    bn = b * n_pts
    tile = _row_tile(bn)
    bn_pad = _round_up(bn, tile)

    ze_flat = _pad_rows(ze.reshape(bn, d).astype(jnp.float32), bn_pad)
    cp_rows = _pad_rows(jnp.repeat(c_prob.astype(jnp.float32), n_pts, axis=0), bn_pad)  # (rows, C)
    g_rows = _pad_rows(_codeword_gumbel(k_code, (bn, ck)), bn_pad)                      # (rows, C*K)

    books_flat, booksT_flat, b2_flat = _flat_books(books)
    prec_arr = jnp.reshape(precision_q, (1,)).astype(jnp.float32)
    temp_arr = jnp.asarray([temperature], jnp.float32)

    grid = (bn_pad // tile,)
    kernel = functools.partial(_train_kernel, n_clusters=n_clusters, book_size=book_size)

    probs_cat, zq = pl.pallas_call(
        kernel,
        out_shape=(
            jax.ShapeDtypeStruct((bn_pad, 2 * book_size), jnp.float32),   # prob || log_prob
            jax.ShapeDtypeStruct((bn_pad, d), jnp.float32),               # zq
        ),
        grid=grid,
        in_specs=[
            pl.BlockSpec(memory_space=pltpu.MemorySpace.SMEM),            # precision_q (1,)
            pl.BlockSpec(memory_space=pltpu.MemorySpace.SMEM),            # temperature (1,)
            pl.BlockSpec((tile, d), lambda i: (i, 0)),                    # ze rows
            pl.BlockSpec((d, ck), lambda i: (0, 0)),                      # books^T (fused over C)
            pl.BlockSpec((ck, d), lambda i: (0, 0)),                      # books   (fused over C)
            pl.BlockSpec((1, ck), lambda i: (0, 0)),                      # ||book||^2
            pl.BlockSpec((tile, n_clusters), lambda i: (i, 0)),           # per-row class prob
            pl.BlockSpec((tile, ck), lambda i: (i, 0)),                   # Gumbel noise
        ],
        out_specs=(
            pl.BlockSpec((tile, 2 * book_size), lambda i: (i, 0)),
            pl.BlockSpec((tile, d), lambda i: (i, 0)),
        ),
        compiler_params=_COMPILER_PARAMS,
    )(prec_arr, temp_arr, ze_flat, booksT_flat, books_flat, b2_flat, cp_rows, g_rows)

    prob = probs_cat[:bn, :book_size].reshape(b, n_pts, book_size)
    log_prob = probs_cat[:bn, book_size:].reshape(b, n_pts, book_size)
    zq = zq[:bn].reshape(b, n_pts, d)
    return zq, precision_q, prob, log_prob


def gvq_forward_eval(params, ze, c_logits):
    """is_train=False path."""
    b, n_pts, d = ze.shape
    books = params["books"].astype(jnp.float32)
    n_clusters, book_size, _ = books.shape
    ck = n_clusters * book_size

    precision_q = _precision(params["log_param_q"])
    prec_arr = jnp.reshape(precision_q, (1,)).astype(jnp.float32)

    idx = jnp.argmax(c_logits, axis=-1)                              # (B,)
    one_hot = jax.nn.one_hot(idx, n_clusters, dtype=jnp.float32)     # (B, C)

    bn = b * n_pts
    tile = _row_tile(bn)
    bn_pad = _round_up(bn, tile)

    ze_flat = _pad_rows(ze.reshape(bn, d).astype(jnp.float32), bn_pad)
    oh_rows = _pad_rows(jnp.repeat(one_hot, n_pts, axis=0), bn_pad)  # (rows, C)

    books_flat, booksT_flat, b2_flat = _flat_books(books)
    grid = (bn_pad // tile,)
    kernel = functools.partial(_eval_kernel, n_clusters=n_clusters, book_size=book_size)

    # NOTE: distances are computed against all C books and masked per row; for very large
    # C*K*D a grid=(B,) scalar-prefetch variant that DMAs only the argmax book wins instead.
    probs_cat, zq = pl.pallas_call(
        kernel,
        out_shape=(
            jax.ShapeDtypeStruct((bn_pad, 2 * book_size), jnp.float32),
            jax.ShapeDtypeStruct((bn_pad, d), jnp.float32),
        ),
        grid=grid,
        in_specs=[
            pl.BlockSpec(memory_space=pltpu.MemorySpace.SMEM),           # precision_q (1,)
            pl.BlockSpec((tile, d), lambda i: (i, 0)),                   # ze rows
            pl.BlockSpec((d, ck), lambda i: (0, 0)),                     # books^T
            pl.BlockSpec((ck, d), lambda i: (0, 0)),                     # books
            pl.BlockSpec((1, ck), lambda i: (0, 0)),                     # ||book||^2
            pl.BlockSpec((tile, n_clusters), lambda i: (i, 0)),          # cluster one-hot
        ],
        out_specs=(
            pl.BlockSpec((tile, 2 * book_size), lambda i: (i, 0)),
            pl.BlockSpec((tile, d), lambda i: (i, 0)),
        ),
        compiler_params=_COMPILER_PARAMS,
    )(prec_arr, ze_flat, booksT_flat, books_flat, b2_flat, oh_rows)

    prob = probs_cat[:bn, :book_size].reshape(b, n_pts, book_size)
    log_prob = probs_cat[:bn, book_size:].reshape(b, n_pts, book_size)
    zq = zq[:bn].reshape(b, n_pts, d)
    return zq, precision_q, prob, log_prob


# ----------------------------------------------------------------------------
# Pure-JAX references (same noise stream as the kernels)
# ----------------------------------------------------------------------------
def _ref_train(params, ze, c_logits, temperature, key):
    b, n, d = ze.shape
    books = params["books"]
    n_clusters, book_size, _ = books.shape
    precision_q = _precision(params["log_param_q"])

    k_cls, k_code = jax.random.split(key)
    c_prob = _class_prob(params, c_logits, temperature, k_cls)                     # (B, C)
    g = _codeword_gumbel(k_code, (b * n, n_clusters * book_size))
    g = g.reshape(b, n, n_clusters, book_size)

    z2 = jnp.sum(ze ** 2, -1)[..., None, None]                                     # (b, n, 1, 1)
    b2 = jnp.sum(books ** 2, -1)[None, None]                                       # (1, 1, C, K)
    cross = jnp.einsum("bnd,ckd->bnck", ze, books, precision="highest")
    logit = -(z2 + b2 - 2.0 * cross) * precision_q                                 # (b, n, C, K)

    logits_mix = jnp.einsum("bnck,bc->bnk", logit, c_prob, precision="highest")
    enc = jax.nn.softmax((logit + g) / temperature, axis=-1)
    zq = jnp.einsum("bnck,ckd,bc->bnd", enc, books, c_prob, precision="highest")
    return (zq, precision_q,
            jax.nn.softmax(logits_mix, -1), jax.nn.log_softmax(logits_mix, -1))


def _ref_eval(params, ze, c_logits):
    books = params["books"]
    precision_q = _precision(params["log_param_q"])
    idx = jnp.argmax(c_logits, axis=-1)
    sel = books[idx]                                                               # (B, K, D)
    z2 = jnp.sum(ze ** 2, -1)[:, :, None]
    b2 = jnp.sum(sel ** 2, -1)[:, None, :]
    cross = jnp.einsum("bnd,bkd->bnk", ze, sel, precision="highest")
    logits = -(z2 + b2 - 2.0 * cross) * precision_q                                # (B, N, K)
    enc = jax.nn.one_hot(jnp.argmax(logits, -1), books.shape[1], dtype=jnp.float32)
    zq = jnp.einsum("bnk,bkd->bnd", enc, sel, precision="highest")
    return (zq, precision_q,
            jax.nn.softmax(logits, -1), jax.nn.log_softmax(logits, -1))


# ----------------------------------------------------------------------------
if __name__ == "__main__":
    # config: book_size=64, latent_ndim=32, n_clusters=4
    B, N, D, K, C = 2, 16, 32, 64, 4
    temperature = 0.5   # self.temperature is set externally in the torch module

    key = jax.random.PRNGKey(0)
    kp, kz, kc, kfwd = jax.random.split(key, 4)
    params = init_params(kp, K, D, C, param_q_init=1.0, param_q_cls_init=1.0)
    ze = jax.random.normal(kz, (B, N, D), jnp.float32)
    c_logits = jax.random.normal(kc, (B, C), jnp.float32)

    # is_train=True path
    zq_t, prec_t, prob_t, logprob_t = gvq_forward_train(params, ze, c_logits, temperature, kfwd)
    # is_train=False path
    zq_e, prec_e, prob_e, logprob_e = gvq_forward_eval(params, ze, c_logits)
    jax.block_until_ready((zq_t, prob_t, logprob_t, zq_e, prob_e, logprob_e))

    tol = dict(rtol=2e-2, atol=2e-2)

    # --- train path: kernel and reference share the exact same jax.random noise stream
    r_zq_t, r_prec, r_prob_t, r_logprob_t = _ref_train(params, ze, c_logits, temperature, kfwd)
    assert np.allclose(np.asarray(zq_t), np.asarray(r_zq_t), **tol)
    assert np.allclose(np.asarray(prob_t), np.asarray(r_prob_t), **tol)
    assert np.allclose(np.asarray(logprob_t), np.asarray(r_logprob_t), **tol)
    assert np.all(np.isfinite(np.asarray(zq_t)))

    # --- eval path: fully deterministic
    r_zq_e, _, r_prob_e, r_logprob_e = _ref_eval(params, ze, c_logits)
    assert np.allclose(np.asarray(zq_e), np.asarray(r_zq_e), **tol)
    assert np.allclose(np.asarray(prob_e), np.asarray(r_prob_e), **tol)
    assert np.allclose(np.asarray(logprob_e), np.asarray(r_logprob_e), **tol)
    assert np.allclose(float(prec_t), float(prec_e))
    assert np.allclose(float(prec_t), float(r_prec))

    # TODO(synk): torch.rand's exact noise stream is not reproduced — the Gumbel noise comes
    # from jax.random (distributionally equivalent), generated in the wrapper because the
    # in-kernel TPU hardware PRNG has no CPU/interpret lowering.
    print("KERNEL_OK")
</pallas_src>

<mosaic_0001>
module attributes {stable_mosaic.version = 11 : i64} {
  func.func @_train_kernel(%arg0: i32, %arg1: memref<1xf32, #tpu.memory_space<smem>>, %arg2: memref<1xf32, #tpu.memory_space<smem>>, %arg3: memref<32x32xf32, #tpu.memory_space<vmem>>, %arg4: memref<32x256xf32, #tpu.memory_space<vmem>>, %arg5: memref<256x32xf32, #tpu.memory_space<vmem>>, %arg6: memref<1x256xf32, #tpu.memory_space<vmem>>, %arg7: memref<32x4xf32, #tpu.memory_space<vmem>>, %arg8: memref<32x256xf32, #tpu.memory_space<vmem>>, %arg9: memref<32x128xf32, #tpu.memory_space<vmem>>, %arg10: memref<32x32xf32, #tpu.memory_space<vmem>>) attributes {dimension_semantics = [#tpu.dimension_semantics<parallel>], iteration_bounds = array<i64: 1>, scalar_prefetch = 0 : i64, scratch_operands = 0 : i64, tpu.core_type = #tpu.core_type<tc>, window_params = [{transform_indices = @transform_0, window_bounds = array<i64: 1>}, {transform_indices = @transform_1, window_bounds = array<i64: 1>}, {transform_indices = @transform_2, window_bounds = array<i64: 32, 32>}, {pipeline_mode = #tpu.pipeline_mode<synchronous>, transform_indices = @transform_3, window_bounds = array<i64: 32, 256>}, {pipeline_mode = #tpu.pipeline_mode<synchronous>, transform_indices = @transform_4, window_bounds = array<i64: 256, 32>}, {pipeline_mode = #tpu.pipeline_mode<synchronous>, transform_indices = @transform_5, window_bounds = array<i64: 1, 256>}, {transform_indices = @transform_6, window_bounds = array<i64: 32, 4>}, {transform_indices = @transform_7, window_bounds = array<i64: 32, 256>}, {transform_indices = @transform_8, window_bounds = array<i64: 32, 128>}, {transform_indices = @transform_9, window_bounds = array<i64: 32, 32>}]} {
    %c0 = arith.constant 0 : index
    %0 = memref.load %arg1[%c0] : memref<1xf32, #tpu.memory_space<smem>>
    %c0_0 = arith.constant 0 : index
    %1 = memref.load %arg2[%c0_0] : memref<1xf32, #tpu.memory_space<smem>>
    %cst = arith.constant 1.000000e+00 : f32
    %2 = arith.divf %cst, %1 : f32
    %c0_1 = arith.constant 0 : index
    %c0_2 = arith.constant 0 : index
    %3 = vector.load %arg3[%c0_1, %c0_2] : memref<32x32xf32, #tpu.memory_space<vmem>>, vector<32x32xf32>
    %4 = arith.mulf %3, %3 : vector<32x32xf32>
    %cst_3 = arith.constant dense<0.000000e+00> : vector<32xf32>
    %5 = vector.multi_reduction <add>, %4, %cst_3 [1] : vector<32x32xf32> to vector<32xf32>
    %6 = vector.shape_cast %5 : vector<32xf32> to vector<32x1xf32>
    %c0_4 = arith.constant 0 : index
    %c0_5 = arith.constant 0 : index
    %7 = vector.load %arg4[%c0_4, %c0_5] : memref<32x256xf32, #tpu.memory_space<vmem>>, vector<32x256xf32>
    %cst_6 = arith.constant dense<0.000000e+00> : vector<32x256xf32>
    %8 = tpu.matmul %3, %7, %cst_6 {dimension_numbers = #tpu.dot_dimension_numbers<[1], [0], [0], [1], [0, 0, 1, 1], [], []>} : vector<32x32xf32>, vector<32x256xf32>, vector<32x256xf32> -> vector<32x256xf32>
    %c0_7 = arith.constant 0 : index
    %c0_8 = arith.constant 0 : index
    %9 = vector.load %arg6[%c0_7, %c0_8] : memref<1x256xf32, #tpu.memory_space<vmem>>, vector<1x256xf32>
    %10 = vector.broadcast %6 : vector<32x1xf32> to vector<32x256xf32>
    %11 = vector.broadcast %9 : vector<1x256xf32> to vector<32x256xf32>
    %12 = arith.addf %10, %11 : vector<32x256xf32>
    %cst_9 = arith.constant 2.000000e+00 : f32
    %13 = vector.broadcast %cst_9 : f32 to vector<32x256xf32>
    %14 = arith.mulf %13, %8 : vector<32x256xf32>
    %15 = arith.subf %12, %14 : vector<32x256xf32>
    %cst_10 = arith.constant 0.000000e+00 : f32
    %16 = vector.broadcast %cst_10 : f32 to vector<32x256xf32>
    %17 = arith.subf %16, %15 : vector<32x256xf32>
    %18 = vector.broadcast %0 : f32 to vector<32x256xf32>
    %19 = arith.mulf %17, %18 : vector<32x256xf32>
    %c0_11 = arith.constant 0 : index
    %c0_12 = arith.constant 0 : index
    %20 = vector.load %arg8[%c0_11, %c0_12] : memref<32x256xf32, #tpu.memory_space<vmem>>, vector<32x256xf32>
    %c0_13 = arith.constant 0 : index
    %c0_14 = arith.constant 0 : index
    %21 = vector.load %arg7[%c0_13, %c0_14] : memref<32x4xf32, #tpu.memory_space<vmem>>, vector<32x4xf32>
    %cst_15 = arith.constant 0.000000e+00 : f32
    %22 = vector.broadcast %cst_15 : f32 to vector<32x64xf32>
    %23 = vector.extract_strided_slice %19 {offsets = [0, 0], sizes = [32, 64], strides = [1, 1]} : vector<32x256xf32> to vector<32x64xf32>
    %24 = vector.extract_strided_slice %21 {offsets = [0, 0], sizes = [32, 1], strides = [1, 1]} : vector<32x4xf32> to vector<32x1xf32>
    %25 = vector.broadcast %24 : vector<32x1xf32> to vector<32x64xf32>
    %26 = arith.mulf %23, %25 : vector<32x64xf32>
    %27 = arith.addf %22, %26 : vector<32x64xf32>
    %28 = vector.extract_strided_slice %20 {offsets = [0, 0], sizes = [32, 64], strides = [1, 1]} : vector<32x256xf32> to vector<32x64xf32>
    %29 = arith.addf %23, %28 : vector<32x64xf32>
    %30 = vector.broadcast %2 : f32 to vector<32x64xf32>
    %31 = arith.mulf %29, %30 : vector<32x64xf32>
    %cst_16 = arith.constant dense<0xFF800000> : vector<32xf32>
    %32 = vector.multi_reduction <maximumf>, %31, %cst_16 [1] : vector<32x64xf32> to vector<32xf32>
    %33 = vector.shape_cast %32 : vector<32xf32> to vector<32x1xf32>
    %34 = vector.broadcast %33 : vector<32x1xf32> to vector<32x64xf32>
    %35 = arith.subf %31, %34 : vector<32x64xf32>
    %36 = math.exp %35 : vector<32x64xf32>
    %cst_17 = arith.constant dense<0.000000e+00> : vector<32xf32>
    %37 = vector.multi_reduction <add>, %36, %cst_17 [1] : vector<32x64xf32> to vector<32xf32>
    %38 = vector.shape_cast %37 : vector<32xf32> to vector<32x1xf32>
    %cst_18 = arith.constant 1.000000e+00 : f32
    %39 = vector.broadcast %cst_18 : f32 to vector<32x1xf32>
    %40 = arith.divf %39, %38 : vector<32x1xf32>
    %41 = vector.broadcast %40 : vector<32x1xf32> to vector<32x64xf32>
    %42 = arith.mulf %36, %41 : vector<32x64xf32>
    %43 = vector.broadcast %24 : vector<32x1xf32> to vector<32x64xf32>
    %44 = arith.mulf %42, %43 : vector<32x64xf32>
    %45 = vector.extract_strided_slice %19 {offsets = [0, 64], sizes = [32, 64], strides = [1, 1]} : vector<32x256xf32> to vector<32x64xf32>
    %46 = vector.extract_strided_slice %21 {offsets = [0, 1], sizes = [32, 1], strides = [1, 1]} : vector<32x4xf32> to vector<32x1xf32>
    %47 = vector.broadcast %46 : vector<32x1xf32> to vector<32x64xf32>
    %48 = arith.mulf %45, %47 : vector<32x64xf32>
    %49 = arith.addf %27, %48 : vector<32x64xf32>
    %50 = vector.extract_strided_slice %20 {offsets = [0, 64], sizes = [32, 64], strides = [1, 1]} : vector<32x256xf32> to vector<32x64xf32>
    %51 = arith.addf %45, %50 : vector<32x64xf32>
    %52 = vector.broadcast %2 : f32 to vector<32x64xf32>
    %53 = arith.mulf %51, %52 : vector<32x64xf32>
    %cst_19 = arith.constant dense<0xFF800000> : vector<32xf32>
    %54 = vector.multi_reduction <maximumf>, %53, %cst_19 [1] : vector<32x64xf32> to vector<32xf32>
    %55 = vector.shape_cast %54 : vector<32xf32> to vector<32x1xf32>
    %56 = vector.broadcast %55 : vector<32x1xf32> to vector<32x64xf32>
    %57 = arith.subf %53, %56 : vector<32x64xf32>
    %58 = math.exp %57 : vector<32x64xf32>
    %cst_20 = arith.constant dense<0.000000e+00> : vector<32xf32>
    %59 = vector.multi_reduction <add>, %58, %cst_20 [1] : vector<32x64xf32> to vector<32xf32>
    %60 = vector.shape_cast %59 : vector<32xf32> to vector<32x1xf32>
    %cst_21 = arith.constant 1.000000e+00 : f32
    %61 = vector.broadcast %cst_21 : f32 to vector<32x1xf32>
    %62 = arith.divf %61, %60 : vector<32x1xf32>
    %63 = vector.broadcast %62 : vector<32x1xf32> to vector<32x64xf32>
    %64 = arith.mulf %58, %63 : vector<32x64xf32>
    %65 = vector.broadcast %46 : vector<32x1xf32> to vector<32x64xf32>
    %66 = arith.mulf %64, %65 : vector<32x64xf32>
    %67 = vector.extract_strided_slice %19 {offsets = [0, 128], sizes = [32, 64], strides = [1, 1]} : vector<32x256xf32> to vector<32x64xf32>
    %68 = vector.extract_strided_slice %21 {offsets = [0, 2], sizes = [32, 1], strides = [1, 1]} : vector<32x4xf32> to vector<32x1xf32>
    %69 = vector.broadcast %68 : vector<32x1xf32> to vector<32x64xf32>
    %70 = arith.mulf %67, %69 : vector<32x64xf32>
    %71 = arith.addf %49, %70 : vector<32x64xf32>
    %72 = vector.extract_strided_slice %20 {offsets = [0, 128], sizes = [32, 64], strides = [1, 1]} : vector<32x256xf32> to vector<32x64xf32>
    %73 = arith.addf %67, %72 : vector<32x64xf32>
    %74 = vector.broadcast %2 : f32 to vector<32x64xf32>
    %75 = arith.mulf %73, %74 : vector<32x64xf32>
    %cst_22 = arith.constant dense<0xFF800000> : vector<32xf32>
    %76 = vector.multi_reduction <maximumf>, %75, %cst_22 [1] : vector<32x64xf32> to vector<32xf32>
    %77 = vector.shape_cast %76 : vector<32xf32> to vector<32x1xf32>
    %78 = vector.broadcast %77 : vector<32x1xf32> to vector<32x64xf32>
    %79 = arith.subf %75, %78 : vector<32x64xf32>
    %80 = math.exp %79 : vector<32x64xf32>
    %cst_23 = arith.constant dense<0.000000e+00> : vector<32xf32>
    %81 = vector.multi_reduction <add>, %80, %cst_23 [1] : vector<32x64xf32> to vector<32xf32>
    %82 = vector.shape_cast %81 : vector<32xf32> to vector<32x1xf32>
    %cst_24 = arith.constant 1.000000e+00 : f32
    %83 = vector.broadcast %cst_24 : f32 to vector<32x1xf32>
    %84 = arith.divf %83, %82 : vector<32x1xf32>
    %85 = vector.broadcast %84 : vector<32x1xf32> to vector<32x64xf32>
    %86 = arith.mulf %80, %85 : vector<32x64xf32>
    %87 = vector.broadcast %68 : vector<32x1xf32> to vector<32x64xf32>
    %88 = arith.mulf %86, %87 : vector<32x64xf32>
    %89 = vector.extract_strided_slice %19 {offsets = [0, 192], sizes = [32, 64], strides = [1, 1]} : vector<32x256xf32> to vector<32x64xf32>
    %90 = vector.extract_strided_slice %21 {offsets = [0, 3], sizes = [32, 1], strides = [1, 1]} : vector<32x4xf32> to vector<32x1xf32>
    %91 = vector.broadcast %90 : vector<32x1xf32> to vector<32x64xf32>
    %92 = arith.mulf %89, %91 : vector<32x64xf32>
    %93 = arith.addf %71, %92 : vector<32x64xf32>
    %94 = vector.extract_strided_slice %20 {offsets = [0, 192], sizes = [32, 64], strides = [1, 1]} : vector<32x256xf32> to vector<32x64xf32>
    %95 = arith.addf %89, %94 : vector<32x64xf32>
    %96 = vector.broadcast %2 : f32 to vector<32x64xf32>
    %97 = arith.mulf %95, %96 : vector<32x64xf32>
    %cst_25 = arith.constant dense<0xFF800000> : vector<32xf32>
    %98 = vector.multi_reduction <maximumf>, %97, %cst_25 [1] : vector<32x64xf32> to vector<32xf32>
    %99 = vector.shape_cast %98 : vector<32xf32> to vector<32x1xf32>
    %100 = vector.broadcast %99 : vector<32x1xf32> to vector<32x64xf32>
    %101 = arith.subf %97, %100 : vector<32x64xf32>
    %102 = math.exp %101 : vector<32x64xf32>
    %cst_26 = arith.constant dense<0.000000e+00> : vector<32xf32>
    %103 = vector.multi_reduction <add>, %102, %cst_26 [1] : vector<32x64xf32> to vector<32xf32>
    %104 = vector.shape_cast %103 : vector<32xf32> to vector<32x1xf32>
    %cst_27 = arith.constant 1.000000e+00 : f32
    %105 = vector.broadcast %cst_27 : f32 to vector<32x1xf32>
    %106 = arith.divf %105, %104 : vector<32x1xf32>
    %107 = vector.broadcast %106 : vector<32x1xf32> to vector<32x64xf32>
    %108 = arith.mulf %102, %107 : vector<32x64xf32>
    %109 = vector.broadcast %90 : vector<32x1xf32> to vector<32x64xf32>
    %110 = arith.mulf %108, %109 : vector<32x64xf32>
    %111 = tpu.concatenate %44, %66, %88, %110 in 1 : vector<32x64xf32>, vector<32x64xf32>, vector<32x64xf32>, vector<32x64xf32> -> vector<32x256xf32>
    %c0_28 = arith.constant 0 : index
    %c0_29 = arith.constant 0 : index
    %112 = vector.load %arg5[%c0_28, %c0_29] : memref<256x32xf32, #tpu.memory_space<vmem>>, vector<256x32xf32>
    %cst_30 = arith.constant dense<0.000000e+00> : vector<32x32xf32>
    %113 = tpu.matmul %111, %112, %cst_30 {dimension_numbers = #tpu.dot_dimension_numbers<[1], [0], [0], [1], [0, 0, 1, 1], [], []>} : vector<32x256xf32>, vector<256x32xf32>, vector<32x32xf32> -> vector<32x32xf32>
    %c0_31 = arith.constant 0 : index
    %c0_32 = arith.constant 0 : index
    %114 = vector.load %arg10[%c0_31, %c0_32] : memref<32x32xf32, #tpu.memory_space<vmem>>, vector<32x32xf32>
    tpu.vector_store %arg10[%c0_31, %c0_32], %113 {strides = array<i32>} : memref<32x32xf32, #tpu.memory_space<vmem>>, vector<32x32xf32>,
    %cst_33 = arith.constant dense<0xFF800000> : vector<32xf32>
    %115 = vector.multi_reduction <maximumf>, %93, %cst_33 [1] : vector<32x64xf32> to vector<32xf32>
    %116 = vector.shape_cast %115 : vector<32xf32> to vector<32x1xf32>
    %117 = vector.broadcast %116 : vector<32x1xf32> to vector<32x64xf32>
    %118 = arith.subf %93, %117 : vector<32x64xf32>
    %119 = math.exp %118 : vector<32x64xf32>
    %cst_34 = arith.constant dense<0.000000e+00> : vector<32xf32>
    %120 = vector.multi_reduction <add>, %119, %cst_34 [1] : vector<32x64xf32> to vector<32xf32>
    %121 = vector.shape_cast %120 : vector<32xf32> to vector<32x1xf32>
    %cst_35 = arith.constant 1.000000e+00 : f32
    %122 = vector.broadcast %cst_35 : f32 to vector<32x1xf32>
    %123 = arith.divf %122, %121 : vector<32x1xf32>
    %124 = vector.broadcast %123 : vector<32x1xf32> to vector<32x64xf32>
    %125 = arith.mulf %119, %124 : vector<32x64xf32>
    %126 = math.log %121 : vector<32x1xf32>
    %127 = vector.broadcast %126 : vector<32x1xf32> to vector<32x64xf32>
    %128 = arith.subf %118, %127 : vector<32x64xf32>
    %129 = tpu.concatenate %125, %128 in 1 : vector<32x64xf32>, vector<32x64xf32> -> vector<32x128xf32>
    %c0_36 = arith.constant 0 : index
    %c0_37 = arith.constant 0 : index
    %130 = vector.load %arg9[%c0_36, %c0_37] : memref<32x128xf32, #tpu.memory_space<vmem>>, vector<32x128xf32>
    tpu.vector_store %arg9[%c0_36, %c0_37], %129 {strides = array<i32>} : memref<32x128xf32, #tpu.memory_space<vmem>>, vector<32x128xf32>,
    return
  }
  func.func @transform_0(%arg0: i32) -> i32 {
    %c0_i32 = arith.constant 0 : i32
    %c0_i32_0 = arith.constant 0 : i32
    return %c0_i32 : i32
  }
  func.func @transform_1(%arg0: i32) -> i32 {
    %c0_i32 = arith.constant 0 : i32
    %c0_i32_0 = arith.constant 0 : i32
    return %c0_i32 : i32
  }
  func.func @transform_2(%arg0: i32) -> (i32, i32) {
    %c0_i32 = arith.constant 0 : i32
    %c0_i32_0 = arith.constant 0 : i32
    return %arg0, %c0_i32 : i32, i32
  }
  func.func @transform_3(%arg0: i32) -> (i32, i32) {
    %c0_i32 = arith.constant 0 : i32
    %c0_i32_0 = arith.constant 0 : i32
    %c0_i32_1 = arith.constant 0 : i32
    return %c0_i32, %c0_i32_0 : i32, i32
  }
  func.func @transform_4(%arg0: i32) -> (i32, i32) {
    %c0_i32 = arith.constant 0 : i32
    %c0_i32_0 = arith.constant 0 : i32
    %c0_i32_1 = arith.constant 0 : i32
    return %c0_i32, %c0_i32_0 : i32, i32
  }
  func.func @transform_5(%arg0: i32) -> (i32, i32) {
    %c0_i32 = arith.constant 0 : i32
    %c0_i32_0 = arith.constant 0 : i32
    %c0_i32_1 = arith.constant 0 : i32
    return %c0_i32, %c0_i32_0 : i32, i32
  }
  func.func @transform_6(%arg0: i32) -> (i32, i32) {
    %c0_i32 = arith.constant 0 : i32
    %c0_i32_0 = arith.constant 0 : i32
    return %arg0, %c0_i32 : i32, i32
  }
  func.func @transform_7(%arg0: i32) -> (i32, i32) {
    %c0_i32 = arith.constant 0 : i32
    %c0_i32_0 = arith.constant 0 : i32
    return %arg0, %c0_i32 : i32, i32
  }
  func.func @transform_8(%arg0: i32) -> (i32, i32) {
    %c0_i32 = arith.constant 0 : i32
    %c0_i32_0 = arith.constant 0 : i32
    return %arg0, %c0_i32 : i32, i32
  }
  func.func @transform_9(%arg0: i32) -> (i32, i32) {
    %c0_i32 = arith.constant 0 : i32
    %c0_i32_0 = arith.constant 0 : i32
    return %arg0, %c0_i32 : i32, i32
  }
}

</mosaic_0001>

<bundles_post_ra>
// kernel: tpu_custom_call.1
= control target key start
LH: loop header
LB: loop body
LE: loop exit
PB: predicated region body
PF: predicated region fallthrough
CT: control target
= control target key end

     0   :  { %17 = vsyncpa [#allocation5], 0  ;;  %v1105_v5 = vmov 0.0   ;;  %v1106_v9 = vmov 1   ;;  %vm48_vm0 = vcmask 261120   ;;  %s1747_s0 = inlined_call_operand.<no memory space> [shape: f32[1], index: 0, kind: input, shape index: {}]   ;;  %s1748_s1 = inlined_call_operand.<no memory space> [shape: f32[1], index: 1, kind: input, shape index: {}]   ;;  %s1749_s2 = inlined_call_operand.vmem [shape: f32[32,32], index: 2, kind: input, shape index: {}]   ;;  %s1750_s3 = inlined_call_operand.vmem [shape: f32[32,256], index: 3, kind: input, shape index: {}]   ;;  %s1751_s4 = inlined_call_operand.vmem [shape: f32[256,32], index: 4, kind: input, shape index: {}]   ;;  %s1752_s5 = inlined_call_operand.vmem [shape: f32[1,256], index: 5, kind: input, shape index: {}]   ;;  %s1753_s6 = inlined_call_operand.vmem [shape: f32[32,4], index: 6, kind: input, shape index: {}]   ;;  %s1754_s7 = inlined_call_operand.vmem [shape: f32[32,256], index: 7, kind: input, shape index: {}]   ;;  %s1755_s8 = inlined_call_operand.hbm [shape: f32[32,128], index: 8, kind: output, shape index: {0}]   ;;  %s1756_s9 = inlined_call_operand.hbm [shape: f32[32,32], index: 9, kind: output, shape index: {1}]  }
   0x1   :  { %v68_v0 = vld [vmem:[%s1750_s3 + $0x38] sm:$0xff]  ;;  %v67_v1 = vld [vmem:[%s1750_s3 + $0x30] sm:$0xff]  ;;  %v66_v2 = vld [vmem:[%s1750_s3 + $0x28] sm:$0xff]  ;;  %v37_v3 = vstv %s1748_s1  ;;  %145 = vmatprep.mubr.f32.mxu0 %v1105_v5  ;;  %964 = vset.pattern.permute.xlu1 %v1106_v9 }
   0x2   :  { %105 = vmatprep.subr.mxu0 %v68_v0  ;;  %v65_v4 = vld [vmem:[%s1750_s3 + $0x20] sm:$0xff]  ;;  %971 = vrcp.f32 %v37_v3  ;;  %v64_v6 = vld [vmem:[%s1750_s3 + $0x18] sm:$0xff]  ;;  %v63_v7 = vld [vmem:[%s1750_s3 + $0x10] sm:$0xff]  ;;  %963 = vset.pattern.permute.xlu0 %v1106_v9 }
   0x3   :  { %106 = vmatpush1.msra.mxu0 %v67_v1  ;;  %v40_v8 = vld [vmem:[%s1749_s2] sm:$0xff]  ;;  %v41_v10 = vld [vmem:[%s1749_s2 + $0x8] sm:$0xff]  ;;  %v42_v11 = vld [vmem:[%s1749_s2 + $0x10] sm:$0xff] }
   0x4   :  { %107 = vmatprep.subr.mxu0 %v66_v2  ;;  %v43_v12 = vld [vmem:[%s1749_s2 + $0x18] sm:$0xff]  ;;  %v44_v13 = vmul.f32 %v40_v8, %v40_v8  ;;  %v62_v14 = vld [vmem:[%s1750_s3 + $0x8] sm:$0xff]  ;;  %v45_v16 = vmul.f32 %v41_v10, %v41_v10  ;;  %v46_v17 = vmul.f32 %v42_v11, %v42_v11  ;;  %v61_v18 = vld [vmem:[%s1750_s3] sm:$0xff] }
   0x5   :  { %108 = vmatpush1.msra.mxu0 %v65_v4  ;;  %v47_v15 = vmul.f32 %v43_v12, %v43_v12 }
   0x6   :  { %109 = vmatprep.subr.mxu0 %v64_v6  ;;  %v49_v19 = vsel %vm48_vm0, %v44_v13, 0.0  ;;  %v52_v20 = vsel %vm48_vm0, %v45_v16, 0.0 }
   0x7   :  { %110 = vmatpush1.msra.mxu0 %v63_v7  ;;  %50 = vadd.xlane.f32.xlu1 %v49_v19 }
   0x8   :  { %18 = vsyncpa [#allocation7], 0  ;;  %111 = vmatprep.subr.mxu0 %v62_v14  ;;  %v58_v21 = vsel %vm48_vm0, %v47_v15, 0.0  ;;  %53 = vadd.xlane.f32.xlu0 %v52_v20  ;;  %v55_v22 = vsel %vm48_vm0, %v46_v17, 0.0  ;;  %v1215_v24 = vld [vmem:[%s1753_s6 + $0x8] sm:$0xff]  ;;  %v1221_v25 = vld [vmem:[%s1753_s6 + $0x10] sm:$0xff]  ;;  %v172_v31 = vlaneseq  ;;  %v1251_v48 = vstv %s1747_s0 }
   0x9   :  { %112 = vmatpush1.msra.mxu0 %v61_v18  ;;  %v1227_v26 = vld [vmem:[%s1753_s6 + $0x18] sm:$0xff]  ;;  %v1232_v27 = vld [vmem:[%s1753_s6] sm:$0xff]  ;;  %v1107_v28 = vmov 0   ;;  %v1108_v29 = vmov 3   ;;  %v1109_v30 = vmov 2   ;;  %v224_v9 = vld [vmem:[%s1754_s7 + $0x8] sm:$0xff] }
   0xa   :  { %871 = vmatmul.mubr.msk.f32.vlgmr.msra.gmra.mxu0 %vm48_vm0, %v40_v8  ;;  %v173_v32 = vshrl.u32 %v172_v31, 7  ;;  %v170_v34 = vld [vmem:[%s1752_s5] sm:$0x3]  ;;  %vm365_vm1 = vcmask 1048064   ;;  %vm272_vm2 = vcmask 523264  }
   0xb   :  { %151 = vmatprep.mubr.f32.mxu0 %v1105_v5  ;;  %59 = vadd.xlane.f32.xlu1 %v58_v21  ;;  %v223_v54 = vld [vmem:[%s1754_s7] sm:$0xff] }
   0xc   :  { %56 = vadd.xlane.f32.xlu0 %v55_v22  ;;  %v174_v33 = vsub.s32 0, %v173_v32  ;;  %v178_v36 = vsub.s32 1, %v173_v32 }
   0xe   :  { %872 = vmatmul.mubr.msk.f32.gmra.mxu0 %vm48_vm0, %v41_v10  ;;  %v175_v35 = vrot.slane %v170_v34, %v174_v33  ;;  %v179_v38 = vrot.slane %v170_v34, %v178_v36 }
   0xf   :  { %v972_v23 = vpop.eup %971  ;;  %157 = vmatprep.mubr.f32.mxu0 %v1105_v5 }
  0x10   :  { %951 = vpush %v972_v23  ;;  %v227_v23 = vld [vmem:[%s1754_s7 + $0x20] sm:$0xff] }
  0x12   :  { %873 = vmatmul.mubr.msk.f32.gmra.mxu0 %vm48_vm0, %v42_v11 }
  0x13   :  { %163 = vmatprep.mubr.f32.mxu0 %v1105_v5  ;;  %v225_v5 = vld [vmem:[%s1754_s7 + $0x10] sm:$0xff] }
  0x16   :  { %874 = vmatmul.mubr.msk.f32.gmra.mxu0 %vm48_vm0, %v43_v12 }
  0x1c   :  { %330 = vperm.xlu1 %964, %v1215_v24  }
  0x20   :  { %334 = vperm.xlu1 %964, %v1221_v25  }
  0x22   :  { %326 = vperm.xlu0 %963, %v1232_v27  }
  0x24   :  { %338 = vperm.xlu1 %964, %v1227_v26  }
  0x26   :  { %967 = vset.pattern.permute.xlu0 %v1107_v28 }
  0x27   :  { %242 = vperm.xlu0 %967, %v1215_v24  }
  0x28   :  { %965 = vset.pattern.permute.xlu1 %v1108_v29 }
  0x29   :  { %519 = vperm.xlu1 %965, %v1232_v27  }
  0x2b   :  { %968 = vset.pattern.permute.xlu0 %v1109_v30 }
  0x2d   :  { %523 = vperm.xlu1 %965, %v1215_v24  }
  0x31   :  { %527 = vperm.xlu1 %965, %v1221_v25  }
  0x35   :  { %531 = vperm.xlu1 %965, %v1227_v26  }
  0x39   :  { %966 = vset.pattern.permute.xlu1 %v1107_v28 }
  0x3a   :  { %237 = vperm.xlu1 %966, %v1232_v27  }
  0x3e   :  { %247 = vperm.xlu1 %966, %v1221_v25  }
  0x41   :  { %s952_s23 = spop %951 }
  0x42   :  { %252 = vperm.xlu1 %966, %v1227_v26   ;;  %v1260_v2 = vstv %s952_s23 }
  0x46   :  { %969 = vset.pattern.permute.xlu1 %v1109_v30 }
  0x90   :  { %v51_v37 = vpop.xlane.xlu1 %50 }
  0x91   :  { %v182_v39 = vadd.f32 %v175_v35, %v51_v37  ;;  %v54_v41 = vpop.xlane.xlu0 %53  ;;  %v183_v44 = vadd.f32 %v179_v38, %v51_v37  ;;  %v226_v37 = vld [vmem:[%s1754_s7 + $0x18] sm:$0xff] }
  0x92   :  { %v184_v45 = vadd.f32 %v175_v35, %v54_v41  ;;  %v185_v50 = vadd.f32 %v179_v38, %v54_v41 }
  0x94   :  { %v60_v3 = vpop.xlane.xlu1 %59 }
  0x95   :  { %v57_v58 = vpop.xlane.xlu0 %56  ;;  %v188_v8 = vadd.f32 %v175_v35, %v60_v3  ;;  %v189_v30 = vadd.f32 %v179_v38, %v60_v3 }
  0x96   :  { %v186_v61 = vadd.f32 %v175_v35, %v57_v58  ;;  %v187_v11 = vadd.f32 %v179_v38, %v57_v58 }
  0xca   :  { %v147_v40 = vpop.f32.mrf.mxu0 }
  0xcb   :  { %v190_v42 = vmul.f32 2.0, %v147_v40 }
  0xcc   :  { %v149_v43 = vpop.f32.mrf.mxu0 }
  0xcd   :  { %v198_v46 = vsub.f32 %v182_v39, %v190_v42  ;;  %v191_v47 = vmul.f32 2.0, %v149_v43 }
  0xce   :  { %v153_v49 = vpop.f32.mrf.mxu0 }
  0xcf   :  { %v206_v51 = vsub.f32 0.0, %v198_v46  ;;  %v199_v52 = vsub.f32 %v183_v44, %v191_v47  ;;  %v192_v53 = vmul.f32 2.0, %v153_v49 }
  0xd0   :  { %v155_v55 = vpop.f32.mrf.mxu0 }
  0xd1   :  { %v1257_v56 = vmul.f32 %v1251_v48, %v206_v51  ;;  %v207_v57 = vsub.f32 0.0, %v199_v52  ;;  %v200_v59 = vsub.f32 %v184_v45, %v192_v53  ;;  %v193_v60 = vmul.f32 2.0, %v155_v55  ;;  %v228_v53 = vld [vmem:[%s1754_s7 + $0x28] sm:$0xff] }
  0xd2   :  { %v159_v62 = vpop.f32.mrf.mxu0 }
  0xd3   :  { %v263_v63 = vadd.f32 %v223_v54, %v1257_v56  ;;  %v208_v0 = vsub.f32 0.0, %v200_v59  ;;  %v201_v1 = vsub.f32 %v185_v50, %v193_v60  ;;  %v1263_v4 = vmul.f32 %v1251_v48, %v207_v57  ;;  %v229_v50 = vld [vmem:[%s1754_s7 + $0x30] sm:$0xff] }
  0xd4   :  { %v194_v6 = vmul.f32 2.0, %v159_v62  ;;  %v161_v7 = vpop.f32.mrf.mxu0 }
  0xd5   :  { %v1272_v10 = vmul.f32 %v1251_v48, %v208_v0  ;;  %v1275_v14 = vmul.f32 %v1260_v2, %v263_v63  ;;  %v209_v16 = vsub.f32 0.0, %v201_v1  ;;  %v195_v17 = vmul.f32 2.0, %v161_v7  ;;  %v230_v0 = vld [vmem:[%s1754_s7 + $0x38] sm:$0xff]  ;;  %s1110_s7 = smov 64  }
  0xd6   :  { %v202_v12 = vsub.f32 %v186_v61, %v194_v6  ;;  %v165_v13 = vpop.f32.mrf.mxu0  ;;  %v458_v19 = vadd.f32 %v224_v9, %v1263_v4 }
  0xd7   :  { %v264_v15 = vadd.f32 %v225_v5, %v1272_v10  ;;  %v196_v18 = vmul.f32 2.0, %v165_v13  ;;  %v366_v22 = vsel %vm365_vm1, %v1275_v14, -inf  ;;  %v1291_v33 = vmul.f32 %v1251_v48, %v209_v16 }
  0xd8   :  { %v210_v20 = vsub.f32 0.0, %v202_v12  ;;  %v167_v21 = vpop.f32.mrf.mxu0  ;;  %367 = vmax.xlane.f32.xlu0 %v366_v22  ;;  %v203_v34 = vsub.f32 %v187_v11, %v195_v17  ;;  %v273_v36 = vsel %vm272_vm2, %v1275_v14, -inf  ;;  %v1302_v41 = vmul.f32 %v458_v19, %v1260_v2 }
  0xd9   :  { %v204_v28 = vsub.f32 %v188_v8, %v196_v18  ;;  %v1288_v32 = vmul.f32 %v1260_v2, %v264_v15  ;;  %v197_v35 = vmul.f32 2.0, %v167_v21  ;;  %v459_v42 = vadd.f32 %v226_v37, %v1291_v33  ;;  %v1383_v18 = vpop.permute.xlu0 %326 }
  0xda   :  { %v1285_v31 = vmul.f32 %v1251_v48, %v210_v20  ;;  %v211_v43 = vsub.f32 0.0, %v203_v34  ;;  %v558_v47 = vsel %vm365_vm1, %v1302_v41, -inf  ;;  %v466_v58 = vsel %vm272_vm2, %v1302_v41, -inf }
  0xdb   :  { %v212_v39 = vsub.f32 0.0, %v204_v28  ;;  %v369_v40 = vsel %vm365_vm1, %v1288_v32, -inf  ;;  %v205_v44 = vsub.f32 %v189_v30, %v197_v35  ;;  %v276_v46 = vsel %vm272_vm2, %v1288_v32, -inf }
  0xdc   :  { %v265_v38 = vadd.f32 %v227_v23, %v1285_v31  ;;  %370 = vmax.xlane.f32.xlu1 %v369_v40  ;;  %274 = vmax.xlane.f32.xlu0 %v273_v36  ;;  %v1319_v51 = vmul.f32 %v1251_v48, %v211_v43  ;;  %v1322_v52 = vmul.f32 %v459_v42, %v1260_v2 }
  0xdd   :  { %v1306_v45 = vmul.f32 %v1251_v48, %v212_v39  ;;  %v213_v55 = vsub.f32 0.0, %v205_v44  ;;  %v1387_v20 = vpop.permute.xlu0 %242 }
  0xde   :  { %v1313_v49 = vmul.f32 %v1260_v2, %v265_v38  ;;  %v460_v59 = vadd.f32 %v228_v53, %v1319_v51  ;;  %v561_v62 = vsel %vm365_vm1, %v1322_v52, -inf  ;;  %v469_v3 = vsel %vm272_vm2, %v1322_v52, -inf }
  0xdf   :  { %v266_v54 = vadd.f32 %v229_v50, %v1306_v45  ;;  %v1334_v60 = vmul.f32 %v1251_v48, %v213_v55 }
  0xe0   :  { %277 = vmax.xlane.f32.xlu1 %v276_v46  ;;  %559 = vmax.xlane.f32.xlu0 %v558_v47  ;;  %v372_v57 = vsel %vm365_vm1, %v1313_v49, -inf  ;;  %v279_v61 = vsel %vm272_vm2, %v1313_v49, -inf  ;;  %v1352_v5 = vmul.f32 %v460_v59, %v1260_v2 }
  0xe1   :  { %v1341_v63 = vmul.f32 %v1260_v2, %v266_v54  ;;  %v461_v1 = vadd.f32 %v230_v0, %v1334_v60 }
  0xe2   :  { %v564_v7 = vsel %vm365_vm1, %v1352_v5, -inf  ;;  %v472_v11 = vsel %vm272_vm2, %v1352_v5, -inf }
  0xe3   :  { %v375_v48 = vsel %vm365_vm1, %v1341_v63, -inf  ;;  %v282_v6 = vsel %vm272_vm2, %v1341_v63, -inf  ;;  %v1359_v8 = vmul.f32 %v461_v1, %v1260_v2  ;;  %v1369_v2 = vpop.permute.xlu1 %330 }
  0xe4   :  { %373 = vmax.xlane.f32.xlu1 %v372_v57  ;;  %467 = vmax.xlane.f32.xlu0 %v466_v58 }
  0xe5   :  { %v567_v9 = vsel %vm365_vm1, %v1359_v8, -inf  ;;  %v475_v12 = vsel %vm272_vm2, %v1359_v8, -inf }
  0xe7   :  { %v1371_v13 = vpop.permute.xlu1 %334 }
  0xe8   :  { %280 = vmax.xlane.f32.xlu1 %v279_v61  ;;  %562 = vmax.xlane.f32.xlu0 %v561_v62 }
  0xeb   :  { %v1373_v15 = vpop.permute.xlu1 %338 }
  0xec   :  { %376 = vmax.xlane.f32.xlu1 %v375_v48  ;;  %470 = vmax.xlane.f32.xlu0 %v469_v3 }
  0xef   :  { %v1375_v16 = vpop.permute.xlu1 %519 }
  0xf0   :  { %283 = vmax.xlane.f32.xlu1 %v282_v6  ;;  %565 = vmax.xlane.f32.xlu0 %v564_v7 }
  0xf3   :  { %v1377_v17 = vpop.permute.xlu1 %523 }
  0xf4   :  { %568 = vmax.xlane.f32.xlu1 %v567_v9 }
 0x105   :  { %439 = vperm.xlu1 %969, %v1215_v24   ;;  %v1379_v24 = vpop.permute.xlu1 %527 }
 0x106   :  { %435 = vperm.xlu0 %968, %v1232_v27  }
 0x109   :  { %v1381_v27 = vpop.permute.xlu1 %531 }
 0x10d   :  { %v1385_v19 = vpop.permute.xlu1 %237 }
 0x111   :  { %v1389_v21 = vpop.permute.xlu1 %247 }
 0x115   :  { %v1391_v22 = vpop.permute.xlu1 %252 }
 0x125   :  { %473 = vmax.xlane.f32.xlu0 %v472_v11 }
 0x129   :  { %476 = vmax.xlane.f32.xlu1 %v475_v12 }
 0x161   :  { %v368_v23 = vpop.xlane.xlu0 %367 }
 0x162   :  { %v378_v28 = vsub.f32 %v1275_v14, %v368_v23 }
 0x164   :  { %v382_v30 = vmul.f32 1.442695, %v378_v28 }
 0x165   :  { %v371_v34 = vpop.xlane.xlu1 %370  ;;  %v1394_v35 = vpop.xlane.xlu0 %274 }
 0x166   :  { %973 = vpow2.f32 %v382_v30  ;;  %v379_v36 = vsub.f32 %v1288_v32, %v371_v34  ;;  %v342_v30 = vmul.f32 %v1369_v2, %v1272_v10 }
 0x168   :  { %v384_v37 = vmul.f32 1.442695, %v379_v36 }
 0x169   :  { %v1397_v38 = vpop.xlane.xlu1 %277  ;;  %v560_v39 = vpop.xlane.xlu0 %559 }
 0x16a   :  { %975 = vpow2.f32 %v384_v37  ;;  %v570_v40 = vsub.f32 %v1302_v41, %v560_v39  ;;  %v341_v37 = vmul.f32 %v1383_v18, %v1257_v56  ;;  %v535_v39 = vmul.f32 %v1377_v17, %v1291_v33 }
 0x16c   :  { %v574_v42 = vmul.f32 1.442695, %v570_v40  ;;  %v343_v40 = vmul.f32 %v1371_v13, %v1285_v31 }
 0x16d   :  { %v374_v43 = vpop.xlane.xlu1 %373  ;;  %v1400_v44 = vpop.xlane.xlu0 %467 }
 0x16e   :  { %v380_v46 = vsub.f32 %v1313_v49, %v374_v43  ;;  %977 = vpow2.f32 %v574_v42  ;;  %v534_v42 = vmul.f32 %v1375_v16, %v1263_v4  ;;  %v536_v43 = vmul.f32 %v1379_v24, %v1319_v51 }
 0x170   :  { %v386_v47 = vmul.f32 1.442695, %v380_v46  ;;  %v286_v46 = vsub.f32 %v1288_v32, %v1397_v38 }
 0x171   :  { %v1403_v50 = vpop.xlane.xlu1 %280  ;;  %v563_v53 = vpop.xlane.xlu0 %562 }
 0x172   :  { %979 = vpow2.f32 %v386_v47  ;;  %v571_v54 = vsub.f32 %v1322_v52, %v563_v53  ;;  %v291_v47 = vmul.f32 1.442695, %v286_v46 }
 0x173   :  { %v1406_v55 = vpop.eup %973 }
 0x174   :  { %v576_v57 = vmul.f32 1.442695, %v571_v54  ;;  %394 = vrot.lane.b32.xlu1 %v1406_v55, %s1110_s7 }
 0x175   :  { %v377_v58 = vpop.xlane.xlu1 %376  ;;  %v471_v59 = vpop.xlane.xlu0 %470 }
 0x176   :  { %v381_v61 = vsub.f32 %v1341_v63, %v377_v58  ;;  %981 = vpow2.f32 %v576_v57  ;;  %v479_v54 = vsub.f32 %v1322_v52, %v471_v59  ;;  %v287_v57 = vsub.f32 %v1313_v49, %v1403_v50 }
 0x177   :  { %v1411_v62 = vpop.eup %975 }
 0x178   :  { %396 = vrot.lane.b32.xlu0 %v1411_v62, %s1110_s7  ;;  %v388_v48 = vmul.f32 1.442695, %v381_v61 }
 0x179   :  { %v1415_v0 = vpop.xlane.xlu1 %283  ;;  %v566_v1 = vpop.xlane.xlu0 %565 }
 0x17a   :  { %v572_v3 = vsub.f32 %v1352_v5, %v566_v1  ;;  %983 = vpow2.f32 %v388_v48  ;;  %v484_v48 = vmul.f32 1.442695, %v479_v54 }
 0x17b   :  { %v1418_v6 = vpop.eup %977 }
 0x17c   :  { %v578_v7 = vmul.f32 1.442695, %v572_v3  ;;  %586 = vrot.lane.b32.xlu1 %v1418_v6, %s1110_s7  ;;  %v478_v3 = vsub.f32 %v1302_v41, %v1400_v44 }
 0x17d   :  { %v569_v9 = vpop.xlane.xlu1 %568 }
 0x17e   :  { %v573_v11 = vsub.f32 %v1359_v8, %v569_v9  ;;  %985 = vpow2.f32 %v578_v7  ;;  %v293_v7 = vmul.f32 1.442695, %v287_v57  ;;  %v482_v52 = vmul.f32 1.442695, %v478_v3 }
 0x17f   :  { %v1423_v12 = vpop.eup %979 }
 0x180   :  { %v580_v23 = vmul.f32 1.442695, %v573_v11  ;;  %398 = vrot.lane.b32.xlu0 %v1423_v12, %s1110_s7 }
 0x181   :  { %v1472_v53 = vpop.permute.xlu0 %435  ;;  %v1477_v58 = vpop.permute.xlu1 %439 }
 0x182   :  { %987 = vpow2.f32 %v580_v23 }
 0x183   :  { %v1427_v28 = vpop.eup %981  ;;  %989 = vpow2.f32 %v291_v47 }
 0x184   :  { %447 = vperm.xlu0 %968, %v1227_v26   ;;  %588 = vrot.lane.b32.xlu1 %v1427_v28, %s1110_s7 }
 0x187   :  { %v1436_v34 = vpop.eup %983 }
 0x188   :  { %351 = vrot.lane.b32.xlu0 %v342_v30, %s1110_s7 }
 0x189   :  { %970 = vset.pattern.permute.xlu0 %v1108_v29  ;;  %v344_v29 = vmul.f32 %v1373_v15, %v1306_v45 }
 0x18b   :  { %v1438_v36 = vpop.eup %985 }
 0x18c   :  { %400 = vrot.lane.b32.xlu0 %v1436_v34, %s1110_s7  ;;  %590 = vrot.lane.b32.xlu1 %v1438_v36, %s1110_s7 }
 0x18f   :  { %v1444_v26 = vpop.eup %987 }
 0x190   :  { %592 = vrot.lane.b32.xlu0 %v1444_v26, %s1110_s7  ;;  %443 = vperm.xlu1 %969, %v1221_v25   ;;  %v537_v25 = vmul.f32 %v1381_v27, %v1334_v60  ;;  %v1483_v49 = vpop.eup %989 }
 0x194   :  { %355 = vrot.lane.b32.xlu0 %v344_v29, %s1110_s7  ;;  %349 = vrot.lane.b32.xlu1 %v341_v37, %s1110_s7 }
 0x198   :  { %544 = vrot.lane.b32.xlu0 %v535_v39, %s1110_s7  ;;  %353 = vrot.lane.b32.xlu1 %v343_v40, %s1110_s7  ;;  %v288_v40 = vsub.f32 %v1341_v63, %v1415_v0 }
 0x19c   :  { %548 = vrot.lane.b32.xlu0 %v537_v25, %s1110_s7  ;;  %542 = vrot.lane.b32.xlu1 %v534_v42, %s1110_s7  ;;  %v295_v25 = vmul.f32 1.442695, %v288_v40  ;;  %v285_v42 = vsub.f32 %v1275_v14, %v1394_v35  ;;  %v665_v14 = vld [vmem:[%s1751_s4 + $0xf8] sm:$0xff]  ;;  %v660_v40 = vld [vmem:[%s1751_s4 + $0xd0] sm:$0xff] }
 0x19d   :  { %v649_v35 = vld [vmem:[%s1751_s4 + $0x78] sm:$0xff]  ;;  %919 = vmatprep.subr.mxu1 %v665_v14  ;;  %875 = vmatprep.subr.mxu0 %v665_v14 }
 0x19e   :  { %v289_v54 = vmul.f32 1.442695, %v285_v42  ;;  %935 = vmatpush3.msra.mxu1 %v649_v35  ;;  %876 = vmatpush3.msra.mxu0 %v649_v35  ;;  %v657_v35 = vld [vmem:[%s1751_s4 + $0xb8] sm:$0xff] }
 0x1a0   :  { %546 = vrot.lane.b32.xlu1 %v536_v43, %s1110_s7 }
 0x1ae   :  { %v474_v61 = vpop.xlane.xlu0 %473 }
 0x1af   :  { %v480_v1 = vsub.f32 %v1352_v5, %v474_v61  ;;  %v300_v5 = vsel %vm272_vm2, %v1483_v49, 0.0 }
 0x1b1   :  { %v486_v32 = vmul.f32 1.442695, %v480_v1 }
 0x1b2   :  { %v477_v38 = vpop.xlane.xlu1 %476 }
 0x1b3   :  { %991 = vpow2.f32 %v486_v32  ;;  %v481_v9 = vsub.f32 %v1359_v8, %v477_v38  ;;  %v663_v38 = vld [vmem:[%s1751_s4 + $0xe8] sm:$0xff] }
 0x1b4   :  { %993 = vpow2.f32 %v484_v48  ;;  %v664_v48 = vld [vmem:[%s1751_s4 + $0xf0] sm:$0xff] }
 0x1b5   :  { %995 = vpow2.f32 %v293_v7  ;;  %v488_v59 = vmul.f32 1.442695, %v481_v9  ;;  %v648_v7 = vld [vmem:[%s1751_s4 + $0x70] sm:$0xff]  ;;  %920 = vmatprep.subr.mxu1 %v664_v48  ;;  %v647_v9 = vld [vmem:[%s1751_s4 + $0x68] sm:$0xff]  ;;  %877 = vmatprep.subr.mxu0 %v664_v48 }
 0x1b6   :  { %936 = vmatpush3.msra.mxu1 %v648_v7  ;;  %878 = vmatpush3.msra.mxu0 %v648_v7  ;;  %v656_v48 = vld [vmem:[%s1751_s4 + $0xb0] sm:$0xff] }
 0x1b7   :  { %997 = vpow2.f32 %v488_v59  ;;  %921 = vmatprep.subr.mxu1 %v663_v38  ;;  %v646_v59 = vld [vmem:[%s1751_s4 + $0x60] sm:$0xff]  ;;  %879 = vmatprep.subr.mxu0 %v663_v38 }
 0x1b8   :  { %999 = vpow2.f32 %v482_v52  ;;  %v662_v52 = vld [vmem:[%s1751_s4 + $0xe0] sm:$0xff]  ;;  %937 = vmatpush3.msra.mxu1 %v647_v9  ;;  %880 = vmatpush3.msra.mxu0 %v647_v9 }
 0x1b9   :  { %1001 = vpow2.f32 %v295_v25  ;;  %922 = vmatprep.subr.mxu1 %v662_v52  ;;  %881 = vmatprep.subr.mxu0 %v662_v52  ;;  %v655_v52 = vld [vmem:[%s1751_s4 + $0xa8] sm:$0xff] }
 0x1ba   :  { %1003 = vpow2.f32 %v289_v54  ;;  %938 = vmatpush3.msra.mxu1 %v646_v59  ;;  %882 = vmatpush3.msra.mxu0 %v646_v59  ;;  %v659_v54 = vld [vmem:[%s1751_s4 + $0xc8] sm:$0xff] }
 0x1bb   :  { %301 = vadd.xlane.f32.xlu0 %v300_v5  ;;  %v639_v59 = vld [vmem:[%s1751_s4 + $0x28] sm:$0xff] }
 0x1c0   :  { %v1487_v50 = vpop.eup %991 }
 0x1c1   :  { %v1489_v41 = vpop.eup %993  ;;  %v496_v44 = vsel %vm272_vm2, %v1487_v50, 0.0 }
 0x1c2   :  { %v1493_v8 = vpop.eup %995  ;;  %497 = vadd.xlane.f32.xlu0 %v496_v44  ;;  %v493_v11 = vsel %vm272_vm2, %v1489_v41, 0.0 }
 0x1c3   :  { %v303_v30 = vsel %vm272_vm2, %v1493_v8, 0.0 }
 0x1c4   :  { %v1497_v23 = vpop.eup %997  ;;  %494 = vadd.xlane.f32.xlu1 %v493_v11  ;;  %v661_v11 = vld [vmem:[%s1751_s4 + $0xd8] sm:$0xff] }
 0x1c5   :  { %v1501_v29 = vpop.eup %999  ;;  %v499_v37 = vsel %vm272_vm2, %v1497_v23, 0.0  ;;  %923 = vmatprep.subr.mxu1 %v661_v11  ;;  %883 = vmatprep.subr.mxu0 %v661_v11 }
 0x1c6   :  { %304 = vadd.xlane.f32.xlu0 %v303_v30  ;;  %v490_v39 = vsel %vm272_vm2, %v1501_v29, 0.0  ;;  %v1512_v47 = vpop.eup %1001  ;;  %v645_v30 = vld [vmem:[%s1751_s4 + $0x58] sm:$0xff] }
 0x1c7   :  { %v306_v61 = vsel %vm272_vm2, %v1512_v47, 0.0  ;;  %v1543_v44 = vpop.eup %1003  ;;  %939 = vmatpush3.msra.mxu1 %v645_v30  ;;  %884 = vmatpush3.msra.mxu0 %v645_v30 }
 0x1c8   :  { %500 = vadd.xlane.f32.xlu1 %v499_v37  ;;  %v297_v25 = vsel %vm272_vm2, %v1543_v44, 0.0  ;;  %924 = vmatprep.subr.mxu1 %v660_v40 }
 0x1c9   :  { %885 = vmatprep.subr.mxu0 %v660_v40  ;;  %v637_v40 = vld [vmem:[%s1751_s4 + $0x18] sm:$0xff] }
 0x1ca   :  { %491 = vadd.xlane.f32.xlu0 %v490_v39 }
 0x1e6   :  { %v395_v57 = vpop.permute.xlu1 %394 }
 0x1ea   :  { %v397_v43 = vpop.permute.xlu0 %396 }
 0x1eb   :  { %v409_v46 = vsel %vm272_vm2, %v397_v43, 0.0  ;;  %v644_v43 = vld [vmem:[%s1751_s4 + $0x50] sm:$0xff] }
 0x1ec   :  { %410 = vadd.xlane.f32.xlu1 %v409_v46  ;;  %940 = vmatpush3.msra.mxu1 %v644_v43 }
 0x1ed   :  { %925 = vmatprep.subr.mxu1 %v659_v54  ;;  %886 = vmatpush3.msra.mxu0 %v644_v43 }
 0x1ee   :  { %v587_v63 = vpop.permute.xlu1 %586  ;;  %887 = vmatprep.subr.mxu0 %v659_v54  ;;  %v652_v54 = vld [vmem:[%s1751_s4 + $0x90] sm:$0xff] }
 0x1ef   :  { %v598_v5 = vsel %vm272_vm2, %v587_v63, 0.0  ;;  %v406_v63 = vsel %vm272_vm2, %v395_v57, 0.0  ;;  %v641_v57 = vld [vmem:[%s1751_s4 + $0x38] sm:$0xff] }
 0x1f0   :  { %307 = vadd.xlane.f32.xlu1 %v306_v61  ;;  %v643_v61 = vld [vmem:[%s1751_s4 + $0x48] sm:$0xff] }
 0x1f1   :  { %941 = vmatpush3.msra.mxu1 %v643_v61  ;;  %888 = vmatpush3.msra.mxu0 %v643_v61  ;;  %v255_v61 = vmul.f32 %v1385_v19, %v1257_v56  ;;  %v635_v56 = vld [vmem:[%s1751_s4 + $0x8] sm:$0xff] }
 0x1f2   :  { %v399_v1 = vpop.permute.xlu0 %398 }
 0x1f3   :  { %v412_v0 = vsel %vm272_vm2, %v399_v1, 0.0  ;;  %v658_v1 = vld [vmem:[%s1751_s4 + $0xc0] sm:$0xff] }
 0x1f4   :  { %413 = vadd.xlane.f32.xlu1 %v412_v0  ;;  %v642_v0 = vld [vmem:[%s1751_s4 + $0x40] sm:$0xff]  ;;  %926 = vmatprep.subr.mxu1 %v658_v1 }
 0x1f5   :  { %942 = vmatpush3.msra.mxu1 %v642_v0  ;;  %889 = vmatprep.subr.mxu0 %v658_v1 }
 0x1f6   :  { %v589_v3 = vpop.permute.xlu1 %588  ;;  %927 = vmatprep.subr.mxu1 %v657_v35  ;;  %890 = vmatpush3.msra.mxu0 %v642_v0 }
 0x1f7   :  { %v601_v32 = vsel %vm272_vm2, %v589_v3, 0.0  ;;  %v640_v3 = vld [vmem:[%s1751_s4 + $0x30] sm:$0xff]  ;;  %943 = vmatpush3.msra.mxu1 %v641_v57  ;;  %891 = vmatprep.subr.mxu0 %v657_v35 }
 0x1f8   :  { %602 = vadd.xlane.f32.xlu0 %v601_v32  ;;  %928 = vmatprep.subr.mxu1 %v656_v48  ;;  %v256_v32 = vmul.f32 %v1387_v20, %v1272_v10  ;;  %v638_v10 = vld [vmem:[%s1751_s4 + $0x20] sm:$0xff] }
 0x1f9   :  { %944 = vmatpush3.msra.mxu1 %v640_v3  ;;  %892 = vmatpush3.msra.mxu0 %v641_v57 }
 0x1fa   :  { %929 = vmatprep.subr.mxu1 %v655_v52  ;;  %893 = vmatprep.subr.mxu0 %v656_v48 }
 0x1fb   :  { %945 = vmatpush3.msra.mxu1 %v639_v59  ;;  %894 = vmatpush3.msra.mxu0 %v640_v3  ;;  %v650_v3 = vld [vmem:[%s1751_s4 + $0x80] sm:$0xff] }
 0x1fc   :  { %599 = vadd.xlane.f32.xlu0 %v598_v5  ;;  %v654_v5 = vld [vmem:[%s1751_s4 + $0xa0] sm:$0xff]  ;;  %895 = vmatprep.subr.mxu0 %v655_v52 }
 0x1fd   :  { %930 = vmatprep.subr.mxu1 %v654_v5  ;;  %896 = vmatpush3.msra.mxu0 %v639_v59 }
 0x1fe   :  { %v591_v37 = vpop.permute.xlu1 %590  ;;  %946 = vmatpush3.msra.mxu1 %v638_v10  ;;  %897 = vmatprep.subr.mxu0 %v654_v5 }
 0x1ff   :  { %v1551_v39 = vpop.permute.xlu0 %447  ;;  %v604_v42 = vsel %vm272_vm2, %v591_v37, 0.0  ;;  %v653_v37 = vld [vmem:[%s1751_s4 + $0x98] sm:$0xff]  ;;  %898 = vmatpush3.msra.mxu0 %v638_v10 }
 0x200   :  { %298 = vadd.xlane.f32.xlu0 %v297_v25  ;;  %605 = vadd.xlane.f32.xlu1 %v604_v42  ;;  %v258_v25 = vmul.f32 %v1391_v22, %v1306_v45  ;;  %v451_v42 = vmul.f32 %v1477_v58, %v1291_v33  ;;  %v636_v45 = vld [vmem:[%s1751_s4 + $0x10] sm:$0xff]  ;;  %v453_v35 = vmul.f32 %v1551_v39, %v1334_v60  ;;  %v634_v60 = vld [vmem:[%s1751_s4] sm:$0xff] }
 0x201   :  { %931 = vmatprep.subr.mxu1 %v653_v37  ;;  %899 = vmatprep.subr.mxu0 %v653_v37 }
 0x202   :  { %947 = vmatpush3.msra.mxu1 %v637_v40  ;;  %900 = vmatpush3.msra.mxu0 %v637_v40 }
 0x203   :  { %v352_v46 = vpop.permute.xlu0 %351  ;;  %932 = vmatprep.subr.mxu1 %v652_v54  ;;  %901 = vmatprep.subr.mxu0 %v652_v54 }
 0x204   :  { %407 = vadd.xlane.f32.xlu0 %v406_v63  ;;  %v362_v11 = vadd.f32 %v352_v46, %v256_v32  ;;  %v651_v63 = vld [vmem:[%s1751_s4 + $0x88] sm:$0xff]  ;;  %948 = vmatpush3.msra.mxu1 %v636_v45  ;;  %v450_v32 = vmul.f32 %v1472_v53, %v1263_v4  ;;  %s1111_s4 = smov [#allocation6]  }
 0x205   :  { %933 = vmatprep.subr.mxu1 %v651_v63  ;;  %902 = vmatpush3.msra.mxu0 %v636_v45  ;;  %s856_s5 = sshll.u32 %s1111_s4, 4  ;;  %s857_s5 = int_to_ptr.vmem [resolvable:$true] %s856_s5 }
 0x206   :  { %v455_v33 = vadd.f32 %v451_v42, %v362_v11  ;;  %949 = vmatpush3.msra.mxu1 %v635_v56  ;;  %903 = vmatprep.subr.mxu0 %v651_v63  ;;  %p1066_p1 = scmp.lt.s32.totalorder %s857_s5, %s857_s5 }
 0x207   :  { %v401_v14 = vpop.permute.xlu0 %400  ;;  %934 = vmatprep.subr.mxu1 %v650_v3  ;;  %904 = vmatpush3.msra.mxu0 %v635_v56 }
 0x208   :  { %v415_v46 = vsel %vm272_vm2, %v401_v14, 0.0  ;;  %950 = vmatpush3.msra.mxu1 %v634_v60  ;;  %905 = vmatprep.subr.mxu0 %v650_v3 }
 0x209   :  { %906 = vmatpush3.msra.mxu0 %v634_v60 }
 0x20b   :  { %v593_v7 = vpop.permute.xlu0 %592  ;;  %v1589_v38 = vpop.permute.xlu1 %443 }
 0x20c   :  { %v607_v9 = vsel %vm272_vm2, %v593_v7, 0.0  ;;  %v257_v7 = vmul.f32 %v1389_v21, %v1285_v31  ;;  %v452_v4 = vmul.f32 %v1589_v38, %v1319_v51 }
 0x20d   :  { %608 = vadd.xlane.f32.xlu1 %v607_v9 }
 0x20f   :  { %v356_v30 = vpop.permute.xlu0 %355  ;;  %v350_v43 = vpop.permute.xlu1 %349 }
 0x210   :  { %v364_v1 = vadd.f32 %v356_v30, %v258_v25  ;;  %v361_v0 = vadd.f32 %v350_v43, %v255_v61 }
 0x211   :  { %416 = vadd.xlane.f32.xlu1 %v415_v46 }
 0x212   :  { %v457_v52 = vadd.f32 %v453_v35, %v364_v1  ;;  %v454_v5 = vadd.f32 %v450_v32, %v361_v0 }
 0x213   :  { %v545_v14 = vpop.permute.xlu0 %544  ;;  %v354_v57 = vpop.permute.xlu1 %353 }
 0x214   :  { %v1631_v48 = vadd.f32 %v545_v14, %v455_v33  ;;  %v363_v59 = vadd.f32 %v354_v57, %v257_v7 }
 0x216   :  { %v758_v9 = vsel %vm272_vm2, %v1631_v48, -inf  ;;  %v456_v40 = vadd.f32 %v452_v4, %v363_v59 }
 0x217   :  { %759 = vmax.xlane.f32.xlu1 %v758_v9  ;;  %v549_v10 = vpop.permute.xlu0 %548  ;;  %v543_v31 = vpop.permute.xlu1 %542 }
 0x218   :  { %v1645_v11 = vadd.f32 %v549_v10, %v457_v52  ;;  %v1649_v30 = vadd.f32 %v543_v31, %v454_v5 }
 0x21a   :  { %v764_v37 = vsel %vm272_vm2, %v1645_v11, -inf  ;;  %v755_v25 = vsel %vm272_vm2, %v1649_v30, -inf }
 0x21b   :  { %765 = vmax.xlane.f32.xlu1 %v764_v37  ;;  %v547_v42 = vpop.permute.xlu1 %546  ;;  %756 = vmax.xlane.f32.xlu0 %v755_v25 }
 0x21c   :  { %v1655_v43 = vadd.f32 %v547_v42, %v456_v40 }
 0x21e   :  { %v761_v51 = vsel %vm272_vm2, %v1655_v43, -inf }
 0x21f   :  { %762 = vmax.xlane.f32.xlu0 %v761_v51 }
 0x244   :  { %v302_v54 = vpop.xlane.xlu0 %301 }
 0x24b   :  { %v498_v61 = vpop.xlane.xlu0 %497 }
 0x24d   :  { %v495_v46 = vpop.xlane.xlu1 %494 }
 0x24f   :  { %v305_v33 = vpop.xlane.xlu0 %304 }
 0x251   :  { %v501_v45 = vpop.xlane.xlu1 %500 }
 0x253   :  { %v492_v0 = vpop.xlane.xlu0 %491 }
 0x275   :  { %v411_v1 = vpop.xlane.xlu1 %410 }
 0x276   :  { %1005 = vrcp.f32 %v411_v1 }
 0x277   :  { %1007 = vrcp.f32 %v495_v46 }
 0x278   :  { %1009 = vrcp.f32 %v302_v54 }
 0x279   :  { %v308_v63 = vpop.xlane.xlu1 %307  ;;  %1011 = vrcp.f32 %v492_v0 }
 0x27d   :  { %v414_v56 = vpop.xlane.xlu1 %413 }
 0x281   :  { %v603_v14 = vpop.xlane.xlu0 %602 }
 0x282   :  { %1013 = vrcp.f32 %v603_v14 }
 0x283   :  { %1015 = vrcp.f32 %v498_v61  ;;  %v1006_v7 = vpop.eup %1005 }
 0x284   :  { %1017 = vrcp.f32 %v414_v56  ;;  %v1008_v32 = vpop.eup %1007  ;;  %v427_v52 = vmul.f32 %v1006_v7, %v1411_v62 }
 0x285   :  { %v600_v35 = vpop.xlane.xlu0 %599  ;;  %v1010_v60 = vpop.eup %1009  ;;  %v511_v5 = vmul.f32 %v1008_v32, %v1489_v41 }
 0x286   :  { %1019 = vrcp.f32 %v600_v35  ;;  %v1012_v59 = vpop.eup %1011  ;;  %v318_v31 = vmul.f32 %v1010_v60, %v1483_v49  ;;  %v431_v40 = vmul.f32 %v427_v52, %v1369_v2 }
 0x287   :  { %1021 = vrcp.f32 %v305_v33  ;;  %v515_v42 = vmul.f32 %v511_v5, %v1477_v58  ;;  %v510_v62 = vmul.f32 %v1012_v59, %v1501_v29 }
 0x288   :  { %v322_v54 = vmul.f32 %v318_v31, %v1387_v20 }
 0x289   :  { %v606_v57 = vpop.xlane.xlu1 %605  ;;  %v299_v3 = vpop.xlane.xlu0 %298 }
 0x28a   :  { %1023 = vrcp.f32 %v606_v57  ;;  %v627_v2 = vsel %vm272_vm2, %v322_v54, %v431_v40 }
 0x28b   :  { %1025 = vrcp.f32 %v299_v3 }
 0x28d   :  { %v408_v9 = vpop.xlane.xlu0 %407 }
 0x28e   :  { %1027 = vrcp.f32 %v408_v9 }
 0x28f   :  { %v1014_v10 = vpop.eup %1013  ;;  %1029 = vrcp.f32 %v501_v45 }
 0x290   :  { %v619_v4 = vmul.f32 %v1014_v10, %v1427_v28  ;;  %v1016_v37 = vpop.eup %1015  ;;  %1031 = vrcp.f32 %v308_v63 }
 0x291   :  { %v1018_v25 = vpop.eup %1017  ;;  %v512_v20 = vmul.f32 %v1016_v37, %v1487_v50 }
 0x292   :  { %v623_v51 = vmul.f32 %v619_v4, %v1377_v17  ;;  %v428_v45 = vmul.f32 %v1018_v25, %v1423_v12  ;;  %v514_v17 = vmul.f32 %v510_v62, %v1472_v53 }
 0x293   :  { %v1020_v46 = vpop.eup %1019  ;;  %v516_v14 = vmul.f32 %v512_v20, %v1589_v38 }
 0x294   :  { %v1022_v41 = vpop.eup %1021  ;;  %v631_v61 = vsel %vm272_vm2, %v515_v42, %v623_v51  ;;  %v618_v49 = vmul.f32 %v1020_v46, %v1418_v6  ;;  %v432_v12 = vmul.f32 %v428_v45, %v1371_v13 }
 0x295   :  { %735 = vmatprep.mubr.f32.mxu1 %v631_v61  ;;  %v319_v1 = vmul.f32 %v1022_v41, %v1493_v8 }
 0x296   :  { %v609_v28 = vpop.xlane.xlu1 %608  ;;  %736 = vmatmul.mubr.f32.vlgmr.msra.gmra.mxu1 %v627_v2  ;;  %v622_v58 = vmul.f32 %v618_v49, %v1375_v16 }
 0x297   :  { %1033 = vrcp.f32 %v609_v28  ;;  %v1024_v29 = vpop.eup %1023  ;;  %v323_v56 = vmul.f32 %v319_v1, %v1389_v21 }
 0x298   :  { %v1026_v33 = vpop.eup %1025  ;;  %v630_v6 = vsel %vm272_vm2, %v514_v17, %v622_v58  ;;  %v620_v63 = vmul.f32 %v1024_v29, %v1438_v36 }
 0x299   :  { %730 = vmatprep.mubr.f32.mxu0 %v630_v6  ;;  %v317_v16 = vmul.f32 %v1026_v33, %v1543_v44  ;;  %v628_v36 = vsel %vm272_vm2, %v323_v56, %v432_v12 }
 0x29a   :  { %v417_v0 = vpop.xlane.xlu1 %416  ;;  %v624_v53 = vmul.f32 %v620_v63, %v1379_v24 }
 0x29b   :  { %1035 = vrcp.f32 %v417_v0  ;;  %v1028_v50 = vpop.eup %1027  ;;  %v321_v13 = vmul.f32 %v317_v16, %v1385_v19 }
 0x29c   :  { %v632_v8 = vsel %vm272_vm2, %v516_v14, %v624_v53  ;;  %v426_v35 = vmul.f32 %v1028_v50, %v1406_v55  ;;  %v1030_v38 = vpop.eup %1029 }
 0x29d   :  { %740 = vmatprep.mubr.f32.mxu1 %v632_v8  ;;  %v1032_v21 = vpop.eup %1031  ;;  %v513_v32 = vmul.f32 %v1030_v38, %v1497_v23 }
 0x29e   :  { %741 = vmatmul.mubr.f32.gmra.mxu1 %v628_v36  ;;  %v430_v57 = vmul.f32 %v426_v35, %v1383_v18  ;;  %v320_v10 = vmul.f32 %v1032_v21, %v1512_v47 }
 0x2a0   :  { %v760_v3 = vpop.xlane.xlu1 %759  ;;  %v626_v44 = vsel %vm272_vm2, %v321_v13, %v430_v57 }
 0x2a1   :  { %v768_v24 = vsub.f32 %v1631_v48, %v760_v3  ;;  %731 = vmatmul.mubr.f32.vlgmr.msra.gmra.mxu0 %v626_v44  ;;  %v517_v48 = vmul.f32 %v513_v32, %v1551_v39 }
 0x2a3   :  { %v773_v7 = vmul.f32 1.442695, %v768_v24 }
 0x2a4   :  { %v1034_v55 = vpop.eup %1033  ;;  %v766_v60 = vpop.xlane.xlu1 %765 }
 0x2a5   :  { %1037 = vpow2.f32 %v773_v7  ;;  %v770_v9 = vsub.f32 %v1645_v11, %v766_v60  ;;  %v757_v52 = vpop.xlane.xlu0 %756  ;;  %v621_v19 = vmul.f32 %v1034_v55, %v1444_v26 }
 0x2a6   :  { %v767_v18 = vsub.f32 %v1649_v30, %v757_v52  ;;  %v324_v30 = vmul.f32 %v320_v10, %v1391_v22 }
 0x2a7   :  { %v777_v59 = vmul.f32 1.442695, %v770_v9  ;;  %v625_v5 = vmul.f32 %v621_v19, %v1381_v27 }
 0x2a8   :  { %v1036_v31 = vpop.eup %1035  ;;  %v771_v4 = vmul.f32 1.442695, %v767_v18 }
 0x2a9   :  { %1039 = vpow2.f32 %v777_v59  ;;  %v763_v23 = vpop.xlane.xlu0 %762  ;;  %v633_v37 = vsel %vm272_vm2, %v517_v48, %v625_v5  ;;  %v429_v11 = vmul.f32 %v1036_v31, %v1436_v34 }
 0x2aa   :  { %1041 = vpow2.f32 %v771_v4  ;;  %v769_v26 = vsub.f32 %v1655_v43, %v763_v23  ;;  %745 = vmatprep.mubr.f32.mxu1 %v633_v37 }
 0x2ab   :  { %v433_v39 = vmul.f32 %v429_v11, %v1373_v15 }
 0x2ac   :  { %v775_v40 = vmul.f32 1.442695, %v769_v26 }
 0x2ad   :  { %v629_v27 = vsel %vm272_vm2, %v324_v30, %v433_v39 }
 0x2ae   :  { %1043 = vpow2.f32 %v775_v40  ;;  %746 = vmatmul.mubr.f32.gmra.mxu1 %v629_v27 }
 0x2b2   :  { %v1703_v47 = vpop.eup %1037 }
 0x2b3   :  { %v782_v25 = vsel %vm272_vm2, %v1703_v47, 0.0 }
 0x2b4   :  { %783 = vadd.xlane.f32.xlu1 %v782_v25 }
 0x2b6   :  { %v1707_v34 = vpop.eup %1039 }
 0x2b7   :  { %v1709_v42 = vpop.eup %1041  ;;  %v788_v22 = vsel %vm272_vm2, %v1707_v34, 0.0 }
 0x2b8   :  { %789 = vadd.xlane.f32.xlu1 %v788_v22  ;;  %v779_v15 = vsel %vm272_vm2, %v1709_v42, 0.0 }
 0x2b9   :  { %780 = vadd.xlane.f32.xlu0 %v779_v15 }
 0x2bb   :  { %v1715_v43 = vpop.eup %1043 }
 0x2bc   :  { %v785_v51 = vsel %vm272_vm2, %v1715_v43, 0.0 }
 0x2bd   :  { %786 = vadd.xlane.f32.xlu0 %v785_v51 }
 0x33d   :  { %v784_v62 = vpop.xlane.xlu1 %783 }
 0x33e   :  { %1045 = vlog2.f32 %v784_v62 }
 0x341   :  { %v790_v46 = vpop.xlane.xlu1 %789 }
 0x342   :  { %v781_v54 = vpop.xlane.xlu0 %780  ;;  %1047 = vlog2.f32 %v790_v46 }
 0x343   :  { %1049 = vlog2.f32 %v781_v54 }
 0x346   :  { %v787_v41 = vpop.xlane.xlu0 %786 }
 0x347   :  { %1051 = vlog2.f32 %v787_v41 }
 0x34b   :  { %v1046_v61 = vpop.eup %1045 }
 0x34c   :  { %v806_v49 = vmul.f32 0.6931472, %v1046_v61 }
 0x34e   :  { %v812_v28 = vsub.f32 %v768_v24, %v806_v49 }
 0x34f   :  { %v1048_v2 = vpop.eup %1047 }
 0x350   :  { %821 = vrot.lane.b32.xlu1 %v812_v28, %s1110_s7  ;;  %v1050_v45 = vpop.eup %1049  ;;  %v810_v20 = vmul.f32 0.6931472, %v1048_v2 }
 0x351   :  { %v804_v17 = vmul.f32 0.6931472, %v1050_v45 }
 0x352   :  { %v814_v0 = vsub.f32 %v770_v9, %v810_v20 }
 0x353   :  { %v811_v29 = vsub.f32 %v767_v18, %v804_v17 }
 0x354   :  { %v1052_v58 = vpop.eup %1051 }
 0x355   :  { %v808_v1 = vmul.f32 0.6931472, %v1052_v58  ;;  %819 = vrot.lane.b32.xlu0 %v811_v29, %s1110_s7 }
 0x356   :  { %v910_v33 = vpop.f32.mrf.mxu1 }
 0x357   :  { %v813_v6 = vsub.f32 %v769_v26, %v808_v1 }
 0x358   :  { %v911_v63 = vpop.f32.mrf.mxu1 }
 0x359   :  { %v912_v12 = vadd.f32 %v911_v63, %v910_v33  ;;  %823 = vrot.lane.b32.xlu1 %v813_v6, %s1110_s7  ;;  %825 = vrot.lane.b32.xlu0 %v814_v0, %s1110_s7  ;;  %s1061_s7 = scalar_lea.vmem %s857_s5, 512 }
 0x35a   :  { %p1062_p0 = scmp.ne.s32.totalorder %s857_s5, %s1061_s7  ;;  %p1067_p2 = scmp.lt.s32.totalorder %s1061_s7, %s1061_s7 }
 0x35b   :  { %752 = vst.msk [vmem:[#allocation6 + $0x8] sm:$0xff] %vm48_vm0, %v912_v12 }
 0x35c   :  { %p1068_p3 = por %p1067_p2, %p1066_p1 }
 0x35e   :  { %v913_v14 = vpop.f32.mrf.mxu1  ;;  %p1069_p4 = pnand %p1068_p3, %p1062_p0 }
 0x360   :  { %v914_v53 = vpop.f32.mrf.mxu1 }
 0x361   :  { %v915_v16 = vadd.f32 %v914_v53, %v913_v14  ;;  %v907_v50 = vpop.f32.mrf.mxu0 }
 0x363   :  { %753 = vst.msk [vmem:[#allocation6 + $0x10] sm:$0xff] %vm48_vm0, %v915_v16  ;;  %v908_v56 = vpop.f32.mrf.mxu0 }
 0x364   :  { %v909_v8 = vadd.f32 %v908_v56, %v907_v50 }
 0x366   :  { %751 = vst.msk [vmem:[#allocation6] sm:$0xff] %vm48_vm0, %v909_v8 }
 0x36e   :  { %v916_v35 = vpop.f32.mrf.mxu1 }
 0x370   :  { %v917_v36 = vpop.f32.mrf.mxu1 }
 0x371   :  { %v918_v13 = vadd.f32 %v917_v36, %v916_v35 }
 0x373   :  { %754 = vst.msk [vmem:[#allocation6 + $0x18] sm:$0xff] %vm48_vm0, %v918_v13 }
 0x374   :  { %1072 = shalt.err (!%p1069_p4)
}
 0x375   :  { %s1112_s22 = smov 128   ;;  %s1113_s23 = smov 8   ;;  %1053 = vrcp.f32 %v784_v62 }
 0x376   :  { %862 = dma.vmem_to_hbm [thread:$0]  %s857_s5, 512, %s1756_s9, [#allocation7], %s1112_s22, %s1112_s22, %s1113_s23   ;;  %1055 = vrcp.f32 %v781_v54 }
 0x377   :  { %1057 = vrcp.f32 %v787_v41  ;;  %s1114_s9 = smov [#allocation4]  }
 0x378   :  { %1059 = vrcp.f32 %v790_v46  ;;  %s844_s1 = sshll.u32 %s1114_s9, 4  ;;  %s845_s1 = int_to_ptr.vmem [resolvable:$true] %s844_s1 }
 0x379   :  { %s1081_s25 = scalar_lea.vmem %s845_s1, 512  ;;  %p1086_p6 = scmp.lt.s32.totalorder %s845_s1, %s845_s1 }
 0x37a   :  { %p1082_p5 = scmp.ne.s32.totalorder %s845_s1, %s1081_s25  ;;  %p1087_p7 = scmp.lt.s32.totalorder %s1081_s25, %s1081_s25 }
 0x37c   :  { %p1088_p8 = por %p1087_p7, %p1086_p6 }
 0x37e   :  { %p1089_p9 = pnand %p1088_p8, %p1082_p5 }
 0x382   :  { %v1054_v57 = vpop.eup %1053 }
 0x383   :  { %v800_v38 = vmul.f32 %v1054_v57, %v1703_v47  ;;  %v1056_v44 = vpop.eup %1055 }
 0x384   :  { %v1058_v21 = vpop.eup %1057  ;;  %v799_v7 = vmul.f32 %v1056_v44, %v1709_v42 }
 0x385   :  { %v1060_v32 = vpop.eup %1059  ;;  %v801_v9 = vmul.f32 %v1058_v21, %v1715_v43 }
 0x386   :  { %v802_v19 = vmul.f32 %v1060_v32, %v1707_v34 }
 0x3c2   :  { %v822_v3 = vpop.permute.xlu1 %821 }
 0x3c3   :  { %v832_v24 = vsel %vm272_vm2, %v800_v38, %v822_v3 }
 0x3c4   :  { %836 = vst [vmem:[#allocation4 + $0x8] sm:$0xff] %v832_v24 }
 0x3c7   :  { %v820_v55 = vpop.permute.xlu0 %819 }
 0x3c8   :  { %v831_v60 = vsel %vm272_vm2, %v799_v7, %v820_v55 }
 0x3c9   :  { %835 = vst [vmem:[#allocation4] sm:$0xff] %v831_v60 }
 0x3cb   :  { %v824_v52 = vpop.permute.xlu1 %823  ;;  %v826_v59 = vpop.permute.xlu0 %825 }
 0x3cc   :  { %v833_v18 = vsel %vm272_vm2, %v801_v9, %v824_v52  ;;  %v834_v48 = vsel %vm272_vm2, %v802_v19, %v826_v59 }
 0x3cd   :  { %837 = vst [vmem:[#allocation4 + $0x10] sm:$0xff] %v833_v18  ;;  %838 = vst [vmem:[#allocation4 + $0x18] sm:$0xff] %v834_v48 }
 0x3ce   :  { %1092 = shalt.err (!%p1089_p9)
}
 0x3cf   :  { %850 = dma.vmem_to_hbm [thread:$0]  %s845_s1, 512, %s1755_s8, [#allocation5], %s1112_s22, %s1112_s22, %s1113_s23  }
 0x3d0   :  { %1101 = dma.done.wait [#allocation5], 512  }
 0x3d1   :  { %1102 = vsyncadd [#allocation5], 4294966784 }
 0x3d2   :  { %1103 = dma.done.wait [#allocation7], 512  }
 0x3d3   :  { %1104 = vsyncadd [#allocation7], 4294966784 }
 0x3d4   :  { %869 = vsyncpa [#allocation5], 1 }
 0x3d5   :  { %870 = vsyncpa [#allocation7], 1 }

</bundles_post_ra>
